<compile_context>
chip_gen: v5e
topology: v5e:2x2
jax: 0.10.0
libtpu: 0.0.40
codegen_flags: <defaults>
</compile_context>

<pallas_src>
import functools

import jax
import jax.numpy as jnp
from jax import lax
from jax.experimental import pallas as pl
from jax.experimental.pallas import tpu as pltpu


# ---------------------------------------------------------------------------
# Pass 1: gate * x321, pointwise conv (bf16 MXU), stage x328, accumulate stats
# ---------------------------------------------------------------------------
def _gate_matmul_stats_kernel(scale_ref, x321_ref, w_ref,
                              x328_ref, sum_ref, sq_ref):
    # Gate this P tile with its *own sample's* SE scale (correct for N > 1:
    # the scale BlockSpec selects row n of the [N, 1, C] scale tensor).
    x327 = x321_ref[...] * scale_ref[...]                       # (TILE_P, C) f32

    # bf16 inputs on the MXU, f32 accumulation.
    x328 = jnp.dot(x327.astype(jnp.bfloat16), w_ref[...],
                   preferred_element_type=jnp.float32)          # (TILE_P, C) f32
    x328_ref[...] = x328

    first = jnp.logical_and(pl.program_id(0) == 0, pl.program_id(1) == 0)

    @pl.when(first)
    def _init():
        sum_ref[...] = jnp.zeros_like(sum_ref)
        sq_ref[...] = jnp.zeros_like(sq_ref)

    # Per-channel partial sums in f32 (accumulator outputs stay VMEM-resident
    # because their block index is constant over the whole grid).
    # NOTE: E[x^2] - mean^2 is fine at these magnitudes; switch to a
    # mean-subtracted second pass if |mean| >> std in production.
    sum_ref[...] += jnp.sum(x328, axis=0, keepdims=True)
    sq_ref[...] += jnp.sum(x328 * x328, axis=0, keepdims=True)


# ---------------------------------------------------------------------------
# Pass 2: normalize + affine + residual add (embarrassingly parallel over P)
# ---------------------------------------------------------------------------
def _bn_residual_kernel(x328_ref, x315_ref, bn_scale_ref, bn_shift_ref, out_ref):
    out_ref[...] = (x315_ref[...]
                    + x328_ref[...] * bn_scale_ref[...]
                    + bn_shift_ref[...])


def _pick_tile_p(hw, target):
    """Largest multiple-of-8 divisor of hw that is <= target (or hw itself)."""
    if hw <= target:
        return hw
    for t in range(min(target, hw), 7, -1):
        if hw % t == 0 and t % 8 == 0:
            return t
    return hw


def fused_se_conv_bn_add(x324, x321, x315, w103, b103, w104, gamma, beta,
                         *, eps=1e-5, tile_p=512):
    """All args in torch layout. x324: [N,C_se,1,1]; x321, x315: [N,C,H,W];
    w103: [C,C_se]; b103,[C]; w104: [C,C]; gamma,beta: [C]. Returns NCHW."""
    N, C, H, W = x321.shape
    C_se = x324.shape[1]
    HW = H * W
    P = N * HW
    f32 = jnp.float32

    # --- layout glue: NCHW -> [N, HW, C] (channels on the lane axis) ---------
    # TODO(synk): in an end-to-end model the producer should emit NHWC directly
    # so these full-tensor HBM transposes disappear (they roughly double HBM
    # traffic for this memory-bound fusion when not fused away by XLA).
    x321_f = jnp.transpose(x321, (0, 2, 3, 1)).reshape(N, HW, C).astype(f32)
    x315_f = jnp.transpose(x315, (0, 2, 3, 1)).reshape(N, HW, C).astype(f32)

    # --- SE projection + sigmoid, hoisted out of the per-tile body -----------
    # (also sidesteps the non-multiple-of-128 C_se=348 lane-layout problem)
    scale = jax.nn.sigmoid(
        x324.reshape(N, C_se).astype(f32) @ jnp.transpose(w103).astype(f32)
        + b103.astype(f32)[None, :])                             # [N, C]
    scale = scale.reshape(N, 1, C)

    # Pointwise-conv weight: [C_out, C_in] -> [C_in, C_out], bf16 for the MXU.
    # bf16 halves the resident weight slab (important for v7x's 64 MiB VMEM).
    w104_t = jnp.transpose(w104).astype(jnp.bfloat16)            # [C, C]

    TILE_P = _pick_tile_p(HW, tile_p)
    T = HW // TILE_P

    vmem_limit = 48 * 1024 * 1024  # above the 16/32 MiB defaults, below v7x ~60 MiB

    # ------------------------- pass 1: stats + stage -------------------------
    cost1 = pl.CostEstimate(
        flops=2 * P * C * C,
        transcendentals=0,
        bytes_accessed=2 * P * C * 4 + C * C * 2 + N * C * 4 + 2 * C * 4)

    x328_f, ch_sum, ch_sq = pl.pallas_call(
        _gate_matmul_stats_kernel,
        grid=(N, T),
        in_specs=[
            pl.BlockSpec((None, 1, C), lambda n, t: (n, 0, 0)),        # SE scale row n
            pl.BlockSpec((None, TILE_P, C), lambda n, t: (n, t, 0)),   # x321 tile
            pl.BlockSpec((C, C), lambda n, t: (0, 0)),                 # W resident (bf16)
        ],
        out_specs=(
            pl.BlockSpec((None, TILE_P, C), lambda n, t: (n, t, 0)),   # staged x328
            pl.BlockSpec((1, C), lambda n, t: (0, 0)),                 # sum accumulator
            pl.BlockSpec((1, C), lambda n, t: (0, 0)),                 # sumsq accumulator
        ),
        out_shape=(
            jax.ShapeDtypeStruct((N, HW, C), jnp.float32),
            jax.ShapeDtypeStruct((1, C), jnp.float32),
            jax.ShapeDtypeStruct((1, C), jnp.float32),
        ),
        compiler_params=pltpu.CompilerParams(
            dimension_semantics=("arbitrary", "arbitrary"),
            vmem_limit_bytes=vmem_limit),
        cost_estimate=cost1,
    )(scale, x321_f, w104_t)

    # --------------- finalize BN statistics (tiny [C] math) ------------------
    mean = ch_sum[0] * (1.0 / P)
    var = ch_sq[0] * (1.0 / P) - mean * mean          # biased var (torch training mode)
    inv_std = lax.rsqrt(var + eps)
    g = gamma.astype(f32)
    bn_scale = (g * inv_std).reshape(1, C)
    bn_shift = (beta.astype(f32) - mean * g * inv_std).reshape(1, C)

    # --------------------- pass 2: normalize + residual ----------------------
    cost2 = pl.CostEstimate(
        flops=3 * P * C,
        transcendentals=0,
        bytes_accessed=3 * P * C * 4 + 2 * C * 4)

    out_f = pl.pallas_call(
        _bn_residual_kernel,
        grid=(N, T),
        in_specs=[
            pl.BlockSpec((None, TILE_P, C), lambda n, t: (n, t, 0)),   # staged x328
            pl.BlockSpec((None, TILE_P, C), lambda n, t: (n, t, 0)),   # residual x315
            pl.BlockSpec((1, C), lambda n, t: (0, 0)),                 # bn_scale
            pl.BlockSpec((1, C), lambda n, t: (0, 0)),                 # bn_shift
        ],
        out_specs=pl.BlockSpec((None, TILE_P, C), lambda n, t: (n, t, 0)),
        out_shape=jax.ShapeDtypeStruct((N, HW, C), jnp.float32),
        compiler_params=pltpu.CompilerParams(
            dimension_semantics=("parallel", "parallel"),   # megacore-friendly on v7x
            vmem_limit_bytes=vmem_limit),
        cost_estimate=cost2,
    )(x328_f, x315_f, bn_scale, bn_shift)

    return jnp.transpose(out_f.reshape(N, H, W, C), (0, 3, 1, 2))


# ---------------------------------------------------------------------------
# Pure-JAX f32 reference mirroring torch semantics (BN in training mode)
# ---------------------------------------------------------------------------
def _reference(x324, x321, x315, w103, b103, w104, gamma, beta, eps=1e-5):
    x325 = jnp.einsum('nkhw,ck->nchw', x324, w103) + b103[None, :, None, None]
    x326 = jax.nn.sigmoid(x325)
    x327 = x326 * x321
    x328 = jnp.einsum('nkhw,ck->nchw', x327, w104)
    mean = jnp.mean(x328, axis=(0, 2, 3), keepdims=True)
    var = jnp.var(x328, axis=(0, 2, 3), keepdims=True)   # biased
    x329 = (x328 - mean) / jnp.sqrt(var + eps)
    x329 = x329 * gamma[None, :, None, None] + beta[None, :, None, None]
    return x315 + x329


if __name__ == "__main__":
    # Scaled-down shapes consistent with the module (348->64, 3712->256, 7->8).
    # N=2 exercises the per-sample SE gating path (a correctness concern from review).
    N, C_se, C, H, W = 2, 64, 256, 8, 8

    key = jax.random.PRNGKey(0)
    k = jax.random.split(key, 8)
    x324 = jax.random.normal(k[0], (N, C_se, 1, 1), jnp.float32)
    x321 = jax.random.normal(k[1], (N, C, H, W), jnp.float32)
    x315 = jax.random.normal(k[2], (N, C, H, W), jnp.float32)

    w103 = jax.random.normal(k[3], (C, C_se), jnp.float32) * 0.05   # conv2d103 weight [out,in]
    b103 = jax.random.normal(k[4], (C,), jnp.float32) * 0.05        # conv2d103 bias
    w104 = jax.random.normal(k[5], (C, C), jnp.float32) * 0.05      # conv2d104 weight [out,in]
    gamma = 1.0 + 0.1 * jax.random.normal(k[6], (C,), jnp.float32)  # BN weight
    beta = 0.1 * jax.random.normal(k[7], (C,), jnp.float32)         # BN bias

    # tile_p=32 so the P axis is actually tiled (HW=64 -> 2 tiles per sample).
    fn = jax.jit(functools.partial(fused_se_conv_bn_add, tile_p=32))
    out = jax.block_until_ready(fn(x324, x321, x315, w103, b103, w104, gamma, beta))

    ref = _reference(x324, x321, x315, w103, b103, w104, gamma, beta)
    assert out.shape == (N, C, H, W)
    # Tolerance reflects the bf16 MXU matmul path (per perf review); BN stats,
    # normalization and the residual add are all kept in f32.
    assert jnp.allclose(out, ref, atol=3e-2, rtol=3e-2), \
        float(jnp.max(jnp.abs(out - ref)))

    print("KERNEL_OK")
</pallas_src>

<mosaic_0001>
module attributes {stable_mosaic.version = 11 : i64} {
  func.func @_bn_residual_kernel(%arg0: i32, %arg1: i32, %arg2: memref<1x32x256xf32, #tpu.memory_space<vmem>>, %arg3: memref<1x32x256xf32, #tpu.memory_space<vmem>>, %arg4: memref<1x256xf32, #tpu.memory_space<vmem>>, %arg5: memref<1x256xf32, #tpu.memory_space<vmem>>, %arg6: memref<1x32x256xf32, #tpu.memory_space<vmem>>) attributes {dimension_semantics = [#tpu.dimension_semantics<parallel>, #tpu.dimension_semantics<parallel>], iteration_bounds = array<i64: 2, 2>, scalar_prefetch = 0 : i64, scratch_operands = 0 : i64, tpu.core_type = #tpu.core_type<tc>, window_params = [{transform_indices = @transform_0, window_bounds = array<i64: 1, 32, 256>}, {transform_indices = @transform_1, window_bounds = array<i64: 1, 32, 256>}, {pipeline_mode = #tpu.pipeline_mode<synchronous>, transform_indices = @transform_2, window_bounds = array<i64: 1, 256>}, {pipeline_mode = #tpu.pipeline_mode<synchronous>, transform_indices = @transform_3, window_bounds = array<i64: 1, 256>}, {transform_indices = @transform_4, window_bounds = array<i64: 1, 32, 256>}]} {
    %c0 = arith.constant 0 : index
    %c0_0 = arith.constant 0 : index
    %c0_1 = arith.constant 0 : index
    %0 = vector.load %arg3[%c0, %c0_0, %c0_1] : memref<1x32x256xf32, #tpu.memory_space<vmem>>, vector<1x32x256xf32>
    %1 = vector.shape_cast %0 : vector<1x32x256xf32> to vector<32x256xf32>
    %c0_2 = arith.constant 0 : index
    %c0_3 = arith.constant 0 : index
    %c0_4 = arith.constant 0 : index
    %2 = vector.load %arg2[%c0_2, %c0_3, %c0_4] : memref<1x32x256xf32, #tpu.memory_space<vmem>>, vector<1x32x256xf32>
    %3 = vector.shape_cast %2 : vector<1x32x256xf32> to vector<32x256xf32>
    %c0_5 = arith.constant 0 : index
    %c0_6 = arith.constant 0 : index
    %4 = vector.load %arg4[%c0_5, %c0_6] : memref<1x256xf32, #tpu.memory_space<vmem>>, vector<1x256xf32>
    %5 = vector.broadcast %4 : vector<1x256xf32> to vector<32x256xf32>
    %6 = arith.mulf %3, %5 : vector<32x256xf32>
    %7 = arith.addf %1, %6 : vector<32x256xf32>
    %c0_7 = arith.constant 0 : index
    %c0_8 = arith.constant 0 : index
    %8 = vector.load %arg5[%c0_7, %c0_8] : memref<1x256xf32, #tpu.memory_space<vmem>>, vector<1x256xf32>
    %9 = vector.broadcast %8 : vector<1x256xf32> to vector<32x256xf32>
    %10 = arith.addf %7, %9 : vector<32x256xf32>
    %c0_9 = arith.constant 0 : index
    %c0_10 = arith.constant 0 : index
    %c0_11 = arith.constant 0 : index
    %11 = vector.load %arg6[%c0_9, %c0_10, %c0_11] : memref<1x32x256xf32, #tpu.memory_space<vmem>>, vector<1x32x256xf32>
    %12 = vector.shape_cast %11 : vector<1x32x256xf32> to vector<32x256xf32>
    %13 = vector.shape_cast %10 : vector<32x256xf32> to vector<1x32x256xf32>
    tpu.vector_store %arg6[%c0_9, %c0_10, %c0_11], %13 {strides = array<i32>} : memref<1x32x256xf32, #tpu.memory_space<vmem>>, vector<1x32x256xf32>,
    return
  }
  func.func @transform_0(%arg0: i32, %arg1: i32) -> (i32, i32, i32) {
    %c0_i32 = arith.constant 0 : i32
    %c0_i32_0 = arith.constant 0 : i32
    return %arg0, %arg1, %c0_i32 : i32, i32, i32
  }
  func.func @transform_1(%arg0: i32, %arg1: i32) -> (i32, i32, i32) {
    %c0_i32 = arith.constant 0 : i32
    %c0_i32_0 = arith.constant 0 : i32
    return %arg0, %arg1, %c0_i32 : i32, i32, i32
  }
  func.func @transform_2(%arg0: i32, %arg1: i32) -> (i32, i32) {
    %c0_i32 = arith.constant 0 : i32
    %c0_i32_0 = arith.constant 0 : i32
    %c0_i32_1 = arith.constant 0 : i32
    return %c0_i32, %c0_i32_0 : i32, i32
  }
  func.func @transform_3(%arg0: i32, %arg1: i32) -> (i32, i32) {
    %c0_i32 = arith.constant 0 : i32
    %c0_i32_0 = arith.constant 0 : i32
    %c0_i32_1 = arith.constant 0 : i32
    return %c0_i32, %c0_i32_0 : i32, i32
  }
  func.func @transform_4(%arg0: i32, %arg1: i32) -> (i32, i32, i32) {
    %c0_i32 = arith.constant 0 : i32
    %c0_i32_0 = arith.constant 0 : i32
    return %arg0, %arg1, %c0_i32 : i32, i32, i32
  }
}

module attributes {stable_mosaic.version = 11 : i64} {
  func.func @_gate_matmul_stats_kernel(%arg0: i32, %arg1: i32, %arg2: memref<1x1x256xf32, #tpu.memory_space<vmem>>, %arg3: memref<1x32x256xf32, #tpu.memory_space<vmem>>, %arg4: memref<256x256xbf16, #tpu.memory_space<vmem>>, %arg5: memref<1x32x256xf32, #tpu.memory_space<vmem>>, %arg6: memref<1x256xf32, #tpu.memory_space<vmem>>, %arg7: memref<1x256xf32, #tpu.memory_space<vmem>>) attributes {dimension_semantics = [#tpu.dimension_semantics<arbitrary>, #tpu.dimension_semantics<arbitrary>], iteration_bounds = array<i64: 2, 2>, scalar_prefetch = 0 : i64, scratch_operands = 0 : i64, tpu.core_type = #tpu.core_type<tc>, window_params = [{transform_indices = @transform_0, window_bounds = array<i64: 1, 1, 256>}, {transform_indices = @transform_1, window_bounds = array<i64: 1, 32, 256>}, {pipeline_mode = #tpu.pipeline_mode<synchronous>, transform_indices = @transform_2, window_bounds = array<i64: 256, 256>}, {transform_indices = @transform_3, window_bounds = array<i64: 1, 32, 256>}, {pipeline_mode = #tpu.pipeline_mode<synchronous>, transform_indices = @transform_4, window_bounds = array<i64: 1, 256>}, {pipeline_mode = #tpu.pipeline_mode<synchronous>, transform_indices = @transform_5, window_bounds = array<i64: 1, 256>}]} {
    %c0 = arith.constant 0 : index
    %c0_0 = arith.constant 0 : index
    %c0_1 = arith.constant 0 : index
    %0 = vector.load %arg3[%c0, %c0_0, %c0_1] : memref<1x32x256xf32, #tpu.memory_space<vmem>>, vector<1x32x256xf32>
    %1 = vector.shape_cast %0 : vector<1x32x256xf32> to vector<32x256xf32>
    %c0_2 = arith.constant 0 : index
    %c0_3 = arith.constant 0 : index
    %c0_4 = arith.constant 0 : index
    %2 = vector.load %arg2[%c0_2, %c0_3, %c0_4] : memref<1x1x256xf32, #tpu.memory_space<vmem>>, vector<1x1x256xf32>
    %3 = vector.shape_cast %2 : vector<1x1x256xf32> to vector<1x256xf32>
    %4 = vector.broadcast %3 : vector<1x256xf32> to vector<32x256xf32>
    %5 = arith.mulf %1, %4 : vector<32x256xf32>
    %6 = arith.truncf %5 : vector<32x256xf32> to vector<32x256xbf16>
    %c0_5 = arith.constant 0 : index
    %c0_6 = arith.constant 0 : index
    %7 = vector.load %arg4[%c0_5, %c0_6] : memref<256x256xbf16, #tpu.memory_space<vmem>>, vector<256x256xbf16>
    %cst = arith.constant dense<0.000000e+00> : vector<32x256xf32>
    %8 = tpu.matmul %6, %7, %cst {dimension_numbers = #tpu.dot_dimension_numbers<[1], [0], [0], [1], [0, 0, 1, 1], [], []>} : vector<32x256xbf16>, vector<256x256xbf16>, vector<32x256xf32> -> vector<32x256xf32>
    %c0_7 = arith.constant 0 : index
    %c0_8 = arith.constant 0 : index
    %c0_9 = arith.constant 0 : index
    %9 = vector.load %arg5[%c0_7, %c0_8, %c0_9] : memref<1x32x256xf32, #tpu.memory_space<vmem>>, vector<1x32x256xf32>
    %10 = vector.shape_cast %9 : vector<1x32x256xf32> to vector<32x256xf32>
    %11 = vector.shape_cast %8 : vector<32x256xf32> to vector<1x32x256xf32>
    tpu.vector_store %arg5[%c0_7, %c0_8, %c0_9], %11 {strides = array<i32>} : memref<1x32x256xf32, #tpu.memory_space<vmem>>, vector<1x32x256xf32>,
    %c0_i32 = arith.constant 0 : i32
    %12 = arith.cmpi eq, %arg0, %c0_i32 : i32
    %c0_i32_10 = arith.constant 0 : i32
    %13 = arith.cmpi eq, %arg1, %c0_i32_10 : i32
    %14 = arith.andi %12, %13 : i1
    %15 = arith.extui %14 : i1 to i32
    %c0_i32_11 = arith.constant 0 : i32
    %16 = arith.cmpi ne, %15, %c0_i32_11 : i32
    scf.if %16 {
      %cst_22 = arith.constant 0.000000e+00 : f32
      %28 = vector.broadcast %cst_22 : f32 to vector<1x256xf32>
      %c0_23 = arith.constant 0 : index
      %c0_24 = arith.constant 0 : index
      %29 = vector.load %arg6[%c0_23, %c0_24] : memref<1x256xf32, #tpu.memory_space<vmem>>, vector<1x256xf32>
      tpu.vector_store %arg6[%c0_23, %c0_24], %28 {strides = array<i32>} : memref<1x256xf32, #tpu.memory_space<vmem>>, vector<1x256xf32>,
      %cst_25 = arith.constant 0.000000e+00 : f32
      %30 = vector.broadcast %cst_25 : f32 to vector<1x256xf32>
      %c0_26 = arith.constant 0 : index
      %c0_27 = arith.constant 0 : index
      %31 = vector.load %arg7[%c0_26, %c0_27] : memref<1x256xf32, #tpu.memory_space<vmem>>, vector<1x256xf32>
      tpu.vector_store %arg7[%c0_26, %c0_27], %30 {strides = array<i32>} : memref<1x256xf32, #tpu.memory_space<vmem>>, vector<1x256xf32>,
    } else {
    }
    %c0_12 = arith.constant 0 : index
    %c0_13 = arith.constant 0 : index
    %17 = vector.load %arg6[%c0_12, %c0_13] : memref<1x256xf32, #tpu.memory_space<vmem>>, vector<1x256xf32>
    %cst_14 = arith.constant dense<0.000000e+00> : vector<256xf32>
    %18 = vector.multi_reduction <add>, %8, %cst_14 [0] : vector<32x256xf32> to vector<256xf32>
    %19 = vector.shape_cast %18 : vector<256xf32> to vector<1x256xf32>
    %20 = arith.addf %17, %19 : vector<1x256xf32>
    %c0_15 = arith.constant 0 : index
    %c0_16 = arith.constant 0 : index
    %21 = vector.load %arg6[%c0_15, %c0_16] : memref<1x256xf32, #tpu.memory_space<vmem>>, vector<1x256xf32>
    tpu.vector_store %arg6[%c0_15, %c0_16], %20 {strides = array<i32>} : memref<1x256xf32, #tpu.memory_space<vmem>>, vector<1x256xf32>,
    %c0_17 = arith.constant 0 : index
    %c0_18 = arith.constant 0 : index
    %22 = vector.load %arg7[%c0_17, %c0_18] : memref<1x256xf32, #tpu.memory_space<vmem>>, vector<1x256xf32>
    %23 = arith.mulf %8, %8 : vector<32x256xf32>
    %cst_19 = arith.constant dense<0.000000e+00> : vector<256xf32>
    %24 = vector.multi_reduction <add>, %23, %cst_19 [0] : vector<32x256xf32> to vector<256xf32>
    %25 = vector.shape_cast %24 : vector<256xf32> to vector<1x256xf32>
    %26 = arith.addf %22, %25 : vector<1x256xf32>
    %c0_20 = arith.constant 0 : index
    %c0_21 = arith.constant 0 : index
    %27 = vector.load %arg7[%c0_20, %c0_21] : memref<1x256xf32, #tpu.memory_space<vmem>>, vector<1x256xf32>
    tpu.vector_store %arg7[%c0_20, %c0_21], %26 {strides = array<i32>} : memref<1x256xf32, #tpu.memory_space<vmem>>, vector<1x256xf32>,
    return
  }
  func.func @transform_0(%arg0: i32, %arg1: i32) -> (i32, i32, i32) {
    %c0_i32 = arith.constant 0 : i32
    %c0_i32_0 = arith.constant 0 : i32
    %c0_i32_1 = arith.constant 0 : i32
    return %arg0, %c0_i32, %c0_i32_0 : i32, i32, i32
  }
  func.func @transform_1(%arg0: i32, %arg1: i32) -> (i32, i32, i32) {
    %c0_i32 = arith.constant 0 : i32
    %c0_i32_0 = arith.constant 0 : i32
    return %arg0, %arg1, %c0_i32 : i32, i32, i32
  }
  func.func @transform_2(%arg0: i32, %arg1: i32) -> (i32, i32) {
    %c0_i32 = arith.constant 0 : i32
    %c0_i32_0 = arith.constant 0 : i32
    %c0_i32_1 = arith.constant 0 : i32
    return %c0_i32, %c0_i32_0 : i32, i32
  }
  func.func @transform_3(%arg0: i32, %arg1: i32) -> (i32, i32, i32) {
    %c0_i32 = arith.constant 0 : i32
    %c0_i32_0 = arith.constant 0 : i32
    return %arg0, %arg1, %c0_i32 : i32, i32, i32
  }
  func.func @transform_4(%arg0: i32, %arg1: i32) -> (i32, i32) {
    %c0_i32 = arith.constant 0 : i32
    %c0_i32_0 = arith.constant 0 : i32
    %c0_i32_1 = arith.constant 0 : i32
    return %c0_i32, %c0_i32_0 : i32, i32
  }
  func.func @transform_5(%arg0: i32, %arg1: i32) -> (i32, i32) {
    %c0_i32 = arith.constant 0 : i32
    %c0_i32_0 = arith.constant 0 : i32
    %c0_i32_1 = arith.constant 0 : i32
    return %c0_i32, %c0_i32_0 : i32, i32
  }
}

</mosaic_0001>

<bundles_post_ra>
// kernel: fused_se_conv_bn_add.3
= control target key start
LH: loop header
LB: loop body
LE: loop exit
PB: predicated region body
PF: predicated region fallthrough
CT: control target
= control target key end

     0   :  { %9 = vsyncpa [#allocation3], 0  ;;  %s832_s0 = inlined_call_operand.vmem [shape: f32[2,64,256], index: 0, kind: input, shape index: {}]   ;;  %s833_s1 = inlined_call_operand.vmem [shape: f32[2,64,256], index: 1, kind: input, shape index: {}]   ;;  %s834_s2 = inlined_call_operand.vmem [shape: f32[1,256], index: 2, kind: input, shape index: {}]   ;;  %s835_s3 = inlined_call_operand.vmem [shape: f32[1,256], index: 3, kind: input, shape index: {}]   ;;  %s836_s4 = inlined_call_operand.hbm [shape: f32[2,64,256], index: 4, kind: output, shape index: {}]  }
   0x1   :  { %11 = vsyncpa [#allocation3 + $0x1], 0  ;;  %s672_s15 = smov 0   ;;  %s674_s16 = smov 0  }
   0x2   :  { %s676_s17 = smov 0   ;;  %s678_s18 = smov 0  }
   0x3   :  { %s680_s19 = smov 0   ;;  %s682_s20 = smov 0  }
   0x4   :  { %s684_s21 = smov 0   ;;  %s686_s22 = smov 0  }
   0x5 LB: > { %s454_s23 = sadd.s32 4294967295, %s643_s22   ;;  %s455_s24 = sadd.s32 4294967294, %s643_s22   ;;  %s643_s22 = sphi %s686_s22, %s17_s22   ;;  %s639_s21 = sphi %s684_s21, %s851_s21   ;;  %s635_s20 = sphi %s682_s20, %s850_s20   ;;  %s631_s19 = sphi %s680_s19, %s849_s19   ;;  %s627_s18 = sphi %s678_s18, %s848_s18   ;;  %s623_s17 = sphi %s676_s17, %s847_s17   ;;  %s619_s16 = sphi %s674_s16, %s846_s16   ;;  %s615_s15 = sphi %s672_s15, %s845_s15  }
   0x6   : > { %s26_s25 = sadd.s32 1, %s635_s20  ;;  %s29_s26 = sadd.s32 1, %s639_s21 }
   0x7   : > { %p27_p0 = scmp.ge.s32.totalorder %s26_s25, 2  ;;  %p146_p1 = scmp.ne.s32.totalorder %s623_s17, %s619_s16 }
   0x8   : > { %p147_p2 = scmp.eq.s32.totalorder %s454_s23, 3  ;;  %p152_p5 = scmp.ne.s32.totalorder %s619_s16, %s615_s15 }
   0x9   : > { %s853_s25 = smov (%p27_p0, %s26_s25), 0  ;;  %s855_s26 = smov (!%p27_p0, %s29_s26), %s639_s21 }
   0xa   : > { %839 = sst [smem:[#allocation5_spill]] %s853_s25  ;;  %s132_s27 = ssub.s32 %s635_s20, %s853_s25 }
   0xb   : > { %p723_p3 = por %p147_p2, %p146_p1  ;;  %p31_p4 = scmp.ge.s32.totalorder %s855_s26, 2 }
   0xc   : > { %p153_p6 = scmp.eq.s32.totalorder %s455_s24, 3  ;;  %p458_p7 = scmp.ge.s32.totalorder %s643_s22, 1 }
   0xd   : > { %s857_s26 = smov (%p31_p4, %s855_s26), 0  ;;  %p205_p9 = scmp.lt.s32.totalorder %s643_s22, 5 }
   0xe   : > { %841 = sst [smem:[#allocation6_spill]] %s857_s26  ;;  %p732_p8 = por %p153_p6, %p152_p5 }
   0xf   : > { %s131_s30 = ssub.s32 %s639_s21, %s857_s26  ;;  %s136_s5 = sadd.s32 1, %s623_s17 }
  0x10   : > { %s133_s6 = sor.u32 %s132_s27, %s131_s30  ;;  %p206_p10 = pnand %p458_p7, %p205_p9 }
  0x11   : > { %p134_p11 = scmp.eq.s32.totalorder %s133_s6, 0  ;;  %s460_s8 = sshll.u32 (!%p206_p10), %s627_s18, 2 }
  0x12   : > { %209 = sbr.rel (%p206_p10) target bundleno = 48 (0x30), region = 36  ;;  %p247_p12 = scmp.lt.s32.totalorder (!%p206_p10), %s631_s19, 1 }
  0x13   : > { %s741_s7 = scalar_select %p134_p11, %s623_s17, %s136_s5  }
  0x14   : > { %p249_p13 = scmp.lt.s32.totalorder (!%p206_p10), %s460_s8, 7  ;;  %s243_s14 = sand.u32 (!%p206_p10), 1, %s619_s16  }
  0x15   : > { %s475_s5 = sshll.u32 (!%p206_p10), %s627_s18, 3  ;;  %s471_s18 = sshll.u32 (!%p206_p10), %s631_s19, 4 }
  0x16   : > { %s770_s26 = sshll.u32 (!%p206_p10), %s243_s14, 6  ;;  %s330_s30 = scalar_lea.sflag (!%p206_p10), [#allocation3], %s243_s14 }
  0x17   : > { %s248_s9 = scalar_select %p247_p12, %s631_s19, 1  ;;  %v285_v0 = vld [vmem:[%s834_s2] sm:$0x3] }
  0x18   : > { %s859_s8 = smov (!%p249_p13, %s460_s8), 7  ;;  %v287_v1 = vperm.slane %v285_v0, 0  ;;  %v307_v2 = vld [vmem:[%s835_s3] sm:$0x3]  ;;  %v288_v3 = vperm.slane %v285_v0, 1 }
  0x19   : > { %s462_s12 = sshll.u32 %s248_s9, 4  ;;  %s461_s13 = sshll.u32 %s859_s8, 1  ;;  %v309_v8 = vperm.slane %v307_v2, 0  ;;  %v310_v13 = vperm.slane %v307_v2, 1 }
  0x1a   : > { %s253_s23 = sadd.s32 %s462_s12, %s461_s13  ;;  %s775_s9 = sadd.s32 %s475_s5, %s471_s18 }
  0x1b   : > { %s463_s24 = sshll.u32 %s253_s23, 3  ;;  %s472_s19 = sshll.u32 %s775_s9, 3 }
  0x1c   : > { %s757_s25 = scalar_lea.vmem %s832_s0, %s463_s24  ;;  %s762_s8 = scalar_lea.vmem %s833_s1, %s463_s24 }
  0x1d   : > { %v269_v4 = vld [vmem:[%s762_s8] sm:$0xff]  ;;  %v270_v6 = vld [vmem:[%s762_s8 + $0x8] sm:$0xff]  ;;  %v271_v10 = vld [vmem:[%s762_s8 + $0x10] sm:$0xff]  ;;  %s344_s23 = scalar_lea.hbm %s836_s4, %s472_s19  ;;  %s245_s24 = scalar_lea.vmem [#allocation2], %s770_s26 }
  0x1e   : > { %v277_v5 = vld [vmem:[%s757_s25] sm:$0xff]  ;;  %v278_v9 = vld [vmem:[%s757_s25 + $0x8] sm:$0xff]  ;;  %v279_v11 = vld [vmem:[%s757_s25 + $0x10] sm:$0xff]  ;;  %s345_s27 = sshll.u32 %s245_s24, 4  ;;  %s346_s27 = int_to_ptr.vmem [resolvable:$true] %s345_s27 }
  0x1f   : > { %v291_v7 = vmul.f32 %v287_v1, %v277_v5  ;;  %v292_v12 = vmul.f32 %v288_v3, %v278_v9  ;;  %v293_v14 = vmul.f32 %v287_v1, %v279_v11  ;;  %v272_v15 = vld [vmem:[%s762_s8 + $0x18] sm:$0xff]  ;;  %v273_v17 = vld [vmem:[%s762_s8 + $0x20] sm:$0xff]  ;;  %v274_v21 = vld [vmem:[%s762_s8 + $0x28] sm:$0xff] }
  0x20   : > { %v280_v16 = vld [vmem:[%s757_s25 + $0x18] sm:$0xff]  ;;  %v281_v20 = vld [vmem:[%s757_s25 + $0x20] sm:$0xff]  ;;  %v282_v22 = vld [vmem:[%s757_s25 + $0x28] sm:$0xff] }
  0x21   : > { %v299_v18 = vadd.f32 %v291_v7, %v269_v4  ;;  %v294_v19 = vmul.f32 %v288_v3, %v280_v16  ;;  %v300_v23 = vadd.f32 %v292_v12, %v270_v6  ;;  %v301_v24 = vadd.f32 %v293_v14, %v271_v10  ;;  %v275_v27 = vld [vmem:[%s762_s8 + $0x30] sm:$0xff]  ;;  %v284_v32 = vld [vmem:[%s757_s25 + $0x38] sm:$0xff] }
  0x22   : > { %v295_v25 = vmul.f32 %v287_v1, %v281_v20  ;;  %v296_v26 = vmul.f32 %v288_v3, %v282_v22  ;;  %v283_v28 = vld [vmem:[%s757_s25 + $0x30] sm:$0xff]  ;;  %v276_v37 = vld [vmem:[%s762_s8 + $0x38] sm:$0xff]  ;;  %v298_v40 = vmul.f32 %v288_v3, %v284_v32  ;;  %s347_s25 = sshll.u32 %s344_s23, 4  ;;  %s569_s8 = scalar_lea.hbm %s836_s4, 256  ;;  %s348_s25 = int_to_ptr.hbm [resolvable:$true] %s347_s25 }
  0x23   : > { %v313_v29 = vadd.f32 %v309_v8, %v299_v18  ;;  %v302_v30 = vadd.f32 %v294_v19, %v272_v15  ;;  %v297_v31 = vmul.f32 %v287_v1, %v283_v28  ;;  %v314_v33 = vadd.f32 %v310_v13, %v300_v23  ;;  %s563_s5 = sshra.s32 %s348_s25, 4  ;;  %s564_s5 = int_to_ptr.hbm [resolvable:$true] %s563_s5 }
  0x24   : > { %v315_v34 = vadd.f32 %v309_v8, %v301_v24  ;;  %v303_v35 = vadd.f32 %v295_v25, %v273_v17  ;;  %v304_v36 = vadd.f32 %v296_v26, %v274_v21  ;;  %v306_v44 = vadd.f32 %v298_v40, %v276_v37  ;;  %s565_s6 = scalar_lea.hbm %s564_s5, 64  ;;  %p570_p4 = scmp.lt.s32.totalorder %s564_s5, %s836_s4 }
  0x25   : > { %321 = vst [vmem:[%s245_s24] sm:$0xff] %v313_v29  ;;  %v316_v38 = vadd.f32 %v310_v13, %v302_v30  ;;  %v305_v39 = vadd.f32 %v297_v31, %v275_v27  ;;  %p566_p0 = scmp.ne.s32.totalorder %s564_s5, %s565_s6  ;;  %p571_p5 = scmp.lt.s32.totalorder %s569_s8, %s565_s6 }
  0x26   : > { %322 = vst [vmem:[%s245_s24 + $0x8] sm:$0xff] %v314_v33  ;;  %v317_v41 = vadd.f32 %v309_v8, %v303_v35  ;;  %v318_v42 = vadd.f32 %v310_v13, %v304_v36  ;;  %v320_v45 = vadd.f32 %v310_v13, %v306_v44 }
  0x27   : > { %323 = vst [vmem:[%s245_s24 + $0x10] sm:$0xff] %v315_v34  ;;  %v319_v43 = vadd.f32 %v309_v8, %v305_v39  ;;  %p567_p1 = pnand %p566_p0, %p723_p3  ;;  %p572_p6 = por %p571_p5, %p570_p4 }
  0x28   : > { %324 = vst [vmem:[%s245_s24 + $0x18] sm:$0xff] %v316_v38 }
  0x29   : > { %325 = vst [vmem:[%s245_s24 + $0x20] sm:$0xff] %v317_v41  ;;  %p568_p2 = pneg %p567_p1 }
  0x2a   : > { %326 = vst [vmem:[%s245_s24 + $0x28] sm:$0xff] %v318_v42 }
  0x2b   : > { %327 = vst [vmem:[%s245_s24 + $0x30] sm:$0xff] %v319_v43  ;;  %p573_p7 = pnand %p572_p6, %p568_p2 }
  0x2c   : > { %328 = vst [vmem:[%s245_s24 + $0x38] sm:$0xff] %v320_v45 }
  0x2d   : > { %576 = shalt.err (!%p573_p7)
}
  0x2e   : > { %s645_s14 = smov 256   ;;  %s646_s9 = smov 16  }
  0x2f   : > { %476 = dma.vmem_to_hbm [thread:$0]  (%p723_p3), %s346_s27, 1024, %s348_s25, %s330_s30, %s645_s14, %s645_s14, %s646_s9  }
  0x30 PF: > { %p482_p9 = scmp.ge.s32.totalorder %s643_s22, 2  ;;  %s362_s19 = sand.u32 1, %s615_s15  }
  0x31   : > { %s363_s12 = scalar_lea.sflag [#allocation3], %s362_s19 }
  0x32   : > { %p479_p10 = pnand %p482_p9, %p732_p8 }
  0x34   : > { %p480_p11 = pneg %p479_p10 }
  0x36   : > { %610 = dma.done.wait (%p480_p11), %s363_s12, 1024  }
  0x37   : > { %612 = vsyncadd (%p480_p11), %s363_s12, 4294966272  ;;  %s17_s22 = sadd.s32 1, %s643_s22   ;;  %s843_s28 = sld [smem:[#allocation5_spill]] }
  0x38   : > { %p14_p12 = scmp.ge.s32.totalorder %s17_s22, 6   ;;  %s844_s13 = sld [smem:[#allocation6_spill]] }
  0x39   : > { %s845_s15 = smov %s619_s16  ;;  %s846_s16 = smov %s623_s17 }
  0x3a   : > { %s847_s17 = smov %s741_s7  ;;  %s848_s18 = smov %s635_s20 }
  0x3b   : > { %s849_s19 = smov %s639_s21  ;;  %16 = sbr.rel (!%p14_p12) target bundleno = 5 (0x5), region = 74 }
  0x3d   : > { %s850_s20 = smov %s843_s28 }
  0x3e   : > { %s851_s21 = smov %s844_s13 }
  0x40   :  { %369 = vsyncpa [#allocation3], 1 }
  0x41   :  { %371 = vsyncpa [#allocation3 + $0x1], 1 }

// kernel: fused_se_conv_bn_add.2
= control target key start
LH: loop header
LB: loop body
LE: loop exit
PB: predicated region body
PF: predicated region fallthrough
CT: control target
= control target key end

     0   :  { %s1071_s18 = smov 0   ;;  %s1073_s19 = smov 0   ;;  %s1367_s0 = inlined_call_operand.vmem [shape: f32[2,1,256], index: 0, kind: input, shape index: {}]   ;;  %s1368_s1 = inlined_call_operand.vmem [shape: f32[2,64,256], index: 1, kind: input, shape index: {}]   ;;  %s1369_s2 = inlined_call_operand.vmem [shape: bf16[256,256], index: 2, kind: input, shape index: {}]   ;;  %s1370_s3 = inlined_call_operand.vmem [shape: f32[2,64,256], index: 3, kind: output, shape index: {0}]   ;;  %s1371_s4 = inlined_call_operand.vmem [shape: f32[1,256], index: 4, kind: output, shape index: {1}]   ;;  %s1372_s5 = inlined_call_operand.vmem [shape: f32[1,256], index: 5, kind: output, shape index: {2}]  }
   0x1   :  { %s1075_s20 = smov 0   ;;  %s1077_s21 = smov 0  }
   0x2   :  { %s1079_s22 = smov 0  }
   0x3 LB: > { %s25_s23 = sadd.s32 1, %s1030_s20  ;;  %s28_s24 = sadd.s32 1, %s1034_s21  ;;  %s1038_s22 = sphi %s1079_s22, %s16_s22   ;;  %s1034_s21 = sphi %s1077_s21, %s1377_s21   ;;  %s1030_s20 = sphi %s1075_s20, %s1376_s20   ;;  %s1026_s19 = sphi %s1073_s19, %s1375_s19   ;;  %s1022_s18 = sphi %s1071_s18, %s1374_s18  }
   0x4   : > { %p26_p0 = scmp.ge.s32.totalorder %s25_s23, 2  ;;  %p787_p1 = scmp.ge.s32.totalorder %s1038_s22, 1 }
   0x5   : > { %p213_p2 = scmp.lt.s32.totalorder %s1038_s22, 5 }
   0x6   : > { %s1379_s23 = smov (%p26_p0, %s25_s23), 0  ;;  %s1381_s24 = smov (!%p26_p0, %s28_s24), %s1034_s21 }
   0x7   : > { %p214_p3 = pnand %p787_p1, %p213_p2  ;;  %p30_p4 = scmp.ge.s32.totalorder %s1381_s24, 2 }
   0x8   : > { %p255_p5 = scmp.lt.s32.totalorder (!%p214_p3), %s1026_s19, 1  ;;  %s789_s25 = sshll.u32 (!%p214_p3), %s1022_s18, 2 }
   0x9   : > { %s1383_s24 = smov (%p30_p4, %s1381_s24), 0  ;;  %217 = sbr.rel (%p214_p3) target bundleno = 241 (0xf1), region = 32 }
   0xa   : > { %p262_p6 = scmp.lt.s32.totalorder (!%p214_p3), %s789_s25, 7  ;;  %p583_p7 = scmp.eq.s32.totalorder (!%p214_p3), %s1026_s19, 0 }
   0xb   : > { %p584_p8 = scmp.eq.s32.totalorder (!%p214_p3), %s1022_s18, 0 }
   0xd   : > { %p1313_p9 = pnand (!%p214_p3), %p584_p8, %p583_p7 }
   0xe   : > { %v855_v0 = vld [vmem:[%s1369_s2 + $0x70] sm:$0xf]  ;;  %v942_v1 = vld [vmem:[%s1369_s2 + $0x74] sm:$0xf0]  ;;  %v941_v5 = vld [vmem:[%s1369_s2 + $0x74] sm:$0xf] }
   0xf   : > { %v919_v2 = vld [vmem:[%s1369_s2 + $0xf0] sm:$0xf]  ;;  %v856_v3 = vor.u32 %v942_v1, %v855_v0  ;;  %v958_v4 = vld [vmem:[%s1369_s2 + $0xf4] sm:$0xf0]  ;;  %v857_v6 = vld [vmem:[%s1369_s2 + $0x78] sm:$0xf0] }
  0x10   : > { %v920_v7 = vor.u32 %v958_v4, %v919_v2  ;;  %v860_v8 = vor.u32 %v941_v5, %v857_v6  ;;  %v957_v9 = vld [vmem:[%s1369_s2 + $0xf4] sm:$0xf]  ;;  %v921_v10 = vld [vmem:[%s1369_s2 + $0xf8] sm:$0xf0]  ;;  %v847_v11 = vld [vmem:[%s1369_s2 + $0x60] sm:$0xf] }
  0x11   : > { %499 = vmatpush.bf16.msra.mxu0 %v856_v3  ;;  %v924_v12 = vor.u32 %v957_v9, %v921_v10  ;;  %v940_v13 = vld [vmem:[%s1369_s2 + $0x64] sm:$0xf0]  ;;  %v911_v14 = vld [vmem:[%s1369_s2 + $0xe0] sm:$0xf]  ;;  %v939_v18 = vld [vmem:[%s1369_s2 + $0x64] sm:$0xf] }
  0x12   : > { %v956_v15 = vld [vmem:[%s1369_s2 + $0xe4] sm:$0xf0]  ;;  %518 = vmatpush.bf16.msra.mxu1 %v920_v7  ;;  %537 = vmatpush.bf16.msra.mxu2 %v860_v8  ;;  %v848_v16 = vor.u32 %v940_v13, %v847_v11  ;;  %v849_v19 = vld [vmem:[%s1369_s2 + $0x68] sm:$0xf0]  ;;  %v955_v20 = vld [vmem:[%s1369_s2 + $0xe4] sm:$0xf] }
  0x13   : > { %v912_v17 = vor.u32 %v956_v15, %v911_v14  ;;  %556 = vmatpush.bf16.msra.mxu3 %v924_v12  ;;  %v852_v21 = vor.u32 %v939_v18, %v849_v19  ;;  %v913_v22 = vld [vmem:[%s1369_s2 + $0xe8] sm:$0xf0]  ;;  %v839_v23 = vld [vmem:[%s1369_s2 + $0x50] sm:$0xf]  ;;  %v938_v24 = vld [vmem:[%s1369_s2 + $0x54] sm:$0xf0] }
  0x14   : > { %v916_v25 = vor.u32 %v955_v20, %v913_v22  ;;  %v903_v26 = vld [vmem:[%s1369_s2 + $0xd0] sm:$0xf]  ;;  %v954_v27 = vld [vmem:[%s1369_s2 + $0xd4] sm:$0xf0]  ;;  %v937_v28 = vld [vmem:[%s1369_s2 + $0x54] sm:$0xf]  ;;  %v840_v29 = vor.u32 %v938_v24, %v839_v23 }
  0x15   : > { %500 = vmatpush.bf16.msra.mxu0 %v848_v16  ;;  %v841_v30 = vld [vmem:[%s1369_s2 + $0x58] sm:$0xf0]  ;;  %v953_v31 = vld [vmem:[%s1369_s2 + $0xd4] sm:$0xf]  ;;  %v904_v33 = vor.u32 %v954_v27, %v903_v26  ;;  %v831_v35 = vld [vmem:[%s1369_s2 + $0x40] sm:$0xf] }
  0x16   : > { %v905_v32 = vld [vmem:[%s1369_s2 + $0xd8] sm:$0xf0]  ;;  %519 = vmatpush.bf16.msra.mxu1 %v912_v17  ;;  %538 = vmatpush.bf16.msra.mxu2 %v852_v21  ;;  %v844_v34 = vor.u32 %v937_v28, %v841_v30  ;;  %v936_v36 = vld [vmem:[%s1369_s2 + $0x44] sm:$0xf0]  ;;  %v895_v37 = vld [vmem:[%s1369_s2 + $0xc0] sm:$0xf] }
  0x17   : > { %557 = vmatpush.bf16.msra.mxu3 %v916_v25  ;;  %v908_v38 = vor.u32 %v953_v31, %v905_v32  ;;  %v952_v39 = vld [vmem:[%s1369_s2 + $0xc4] sm:$0xf0]  ;;  %v935_v40 = vld [vmem:[%s1369_s2 + $0x44] sm:$0xf]  ;;  %v833_v41 = vld [vmem:[%s1369_s2 + $0x48] sm:$0xf0]  ;;  %v832_v44 = vor.u32 %v936_v36, %v831_v35 }
  0x18   : > { %v951_v42 = vld [vmem:[%s1369_s2 + $0xc4] sm:$0xf]  ;;  %v897_v43 = vld [vmem:[%s1369_s2 + $0xc8] sm:$0xf0]  ;;  %v896_v45 = vor.u32 %v952_v39, %v895_v37  ;;  %v836_v46 = vor.u32 %v935_v40, %v833_v41  ;;  %v823_v47 = vld [vmem:[%s1369_s2 + $0x30] sm:$0xf] }
  0x19   : > { %501 = vmatpush.bf16.msra.mxu0 %v840_v29  ;;  %v934_v48 = vld [vmem:[%s1369_s2 + $0x34] sm:$0xf0]  ;;  %v887_v49 = vld [vmem:[%s1369_s2 + $0xb0] sm:$0xf]  ;;  %v900_v50 = vor.u32 %v951_v42, %v897_v43  ;;  %v933_v52 = vld [vmem:[%s1369_s2 + $0x34] sm:$0xf] }
  0x1a   : > { %520 = vmatpush.bf16.msra.mxu1 %v904_v33  ;;  %539 = vmatpush.bf16.msra.mxu2 %v844_v34  ;;  %v950_v51 = vld [vmem:[%s1369_s2 + $0xb4] sm:$0xf0]  ;;  %v825_v53 = vld [vmem:[%s1369_s2 + $0x38] sm:$0xf0]  ;;  %v949_v54 = vld [vmem:[%s1369_s2 + $0xb4] sm:$0xf]  ;;  %v824_v56 = vor.u32 %v934_v48, %v823_v47 }
  0x1b   : > { %558 = vmatpush.bf16.msra.mxu3 %v908_v38  ;;  %v889_v55 = vld [vmem:[%s1369_s2 + $0xb8] sm:$0xf0]  ;;  %v888_v57 = vor.u32 %v950_v51, %v887_v49  ;;  %v828_v58 = vor.u32 %v933_v52, %v825_v53  ;;  %v815_v59 = vld [vmem:[%s1369_s2 + $0x20] sm:$0xf]  ;;  %v932_v60 = vld [vmem:[%s1369_s2 + $0x24] sm:$0xf0] }
  0x1c   : > { %v879_v61 = vld [vmem:[%s1369_s2 + $0xa0] sm:$0xf]  ;;  %v892_v62 = vor.u32 %v949_v54, %v889_v55  ;;  %v948_v63 = vld [vmem:[%s1369_s2 + $0xa4] sm:$0xf0]  ;;  %v931_v0 = vld [vmem:[%s1369_s2 + $0x24] sm:$0xf]  ;;  %v816_v4 = vor.u32 %v932_v60, %v815_v59 }
  0x1d   : > { %502 = vmatpush.bf16.msra.mxu0 %v832_v44  ;;  %v817_v1 = vld [vmem:[%s1369_s2 + $0x28] sm:$0xf0]  ;;  %v947_v2 = vld [vmem:[%s1369_s2 + $0xa4] sm:$0xf]  ;;  %v807_v5 = vld [vmem:[%s1369_s2 + $0x10] sm:$0xf]  ;;  %v880_v6 = vor.u32 %v948_v63, %v879_v61 }
  0x1e   : > { %521 = vmatpush.bf16.msra.mxu1 %v896_v45  ;;  %540 = vmatpush.bf16.msra.mxu2 %v836_v46  ;;  %v881_v3 = vld [vmem:[%s1369_s2 + $0xa8] sm:$0xf0]  ;;  %v820_v7 = vor.u32 %v931_v0, %v817_v1  ;;  %v930_v8 = vld [vmem:[%s1369_s2 + $0x14] sm:$0xf0]  ;;  %v871_v9 = vld [vmem:[%s1369_s2 + $0x90] sm:$0xf] }
  0x1f   : > { %559 = vmatpush.bf16.msra.mxu3 %v900_v50  ;;  %v946_v10 = vld [vmem:[%s1369_s2 + $0x94] sm:$0xf0]  ;;  %v884_v11 = vor.u32 %v947_v2, %v881_v3  ;;  %v929_v12 = vld [vmem:[%s1369_s2 + $0x14] sm:$0xf]  ;;  %v809_v13 = vld [vmem:[%s1369_s2 + $0x18] sm:$0xf0]  ;;  %v808_v16 = vor.u32 %v930_v8, %v807_v5 }
  0x20   : > { %v945_v14 = vld [vmem:[%s1369_s2 + $0x94] sm:$0xf]  ;;  %v873_v15 = vld [vmem:[%s1369_s2 + $0x98] sm:$0xf0]  ;;  %v799_v17 = vld [vmem:[%s1369_s2] sm:$0xf]  ;;  %v872_v19 = vor.u32 %v946_v10, %v871_v9  ;;  %v812_v20 = vor.u32 %v929_v12, %v809_v13 }
  0x21   : > { %503 = vmatpush.bf16.msra.mxu0 %v824_v56  ;;  %v928_v18 = vld [vmem:[%s1369_s2 + $0x4] sm:$0xf0]  ;;  %s256_s9 = scalar_select %p255_p5, %s1026_s19, 1  ;;  %v863_v21 = vld [vmem:[%s1369_s2 + $0x80] sm:$0xf]  ;;  %v876_v23 = vor.u32 %v945_v14, %v873_v15 }
  0x22   : > { %522 = vmatpush.bf16.msra.mxu1 %v888_v57  ;;  %541 = vmatpush.bf16.msra.mxu2 %v828_v58  ;;  %v944_v22 = vld [vmem:[%s1369_s2 + $0x84] sm:$0xf0]  ;;  %s1385_s25 = smov (!%p262_p6, %s789_s25), 7  ;;  %v927_v24 = vld [vmem:[%s1369_s2 + $0x4] sm:$0xf]  ;;  %v800_v28 = vor.u32 %v928_v18, %v799_v17 }
  0x23   : > { %560 = vmatpush.bf16.msra.mxu3 %v892_v62  ;;  %v801_v25 = vld [vmem:[%s1369_s2 + $0x8] sm:$0xf0]  ;;  %s788_s26 = sshll.u32 %s256_s9, 1  ;;  %s791_s27 = sshll.u32 %s256_s9, 4  ;;  %v943_v26 = vld [vmem:[%s1369_s2 + $0x84] sm:$0xf]  ;;  %v864_v30 = vor.u32 %v944_v22, %v863_v21 }
  0x24   : > { %v865_v27 = vld [vmem:[%s1369_s2 + $0x88] sm:$0xf0]  ;;  %s258_s10 = scalar_lea.vmem %s1367_s0, %s788_s26  ;;  %s790_s11 = sshll.u32 %s1385_s25, 1  ;;  %v804_v31 = vor.u32 %v927_v24, %v801_v25 }
  0x25   : > { %504 = vmatpush.bf16.msra.mxu0 %v816_v4  ;;  %s1303_s12 = sadd.s32 %s791_s27, %s790_s11  ;;  %v289_v29 = vld [vmem:[%s258_s10] sm:$0x3]  ;;  %v868_v34 = vor.u32 %v943_v26, %v865_v27 }
  0x26   : > { %523 = vmatpush.bf16.msra.mxu1 %v880_v6  ;;  %542 = vmatpush.bf16.msra.mxu2 %v820_v7  ;;  %s792_s9 = sshll.u32 %s1303_s12, 3  ;;  %v291_v32 = vperm.slane %v289_v29, 0  ;;  %v292_v33 = vperm.slane %v289_v29, 1 }
  0x27   : > { %561 = vmatpush.bf16.msra.mxu3 %v884_v11  ;;  %s268_s25 = scalar_lea.vmem %s1368_s1, %s792_s9  ;;  %s1322_s26 = scalar_lea.vmem %s1370_s3, %s792_s9 }
  0x28   : > { %v281_v35 = vld [vmem:[%s268_s25] sm:$0xff]  ;;  %v283_v36 = vld [vmem:[%s268_s25 + $0x10] sm:$0xff]  ;;  %v282_v37 = vld [vmem:[%s268_s25 + $0x8] sm:$0xff] }
  0x29   : > { %505 = vmatpush.bf16.msra.mxu0 %v808_v16  ;;  %v295_v38 = vmul.f32 %v291_v32, %v281_v35  ;;  %v297_v39 = vmul.f32 %v291_v32, %v283_v36  ;;  %v284_v40 = vld [vmem:[%s268_s25 + $0x18] sm:$0xff]  ;;  %v296_v41 = vmul.f32 %v292_v33, %v282_v37  ;;  %v285_v45 = vld [vmem:[%s268_s25 + $0x20] sm:$0xff]  ;;  %v287_v46 = vld [vmem:[%s268_s25 + $0x30] sm:$0xff] }
  0x2a   : > { %524 = vmatpush.bf16.msra.mxu1 %v872_v19  ;;  %543 = vmatpush.bf16.msra.mxu2 %v812_v20  ;;  %v298_v42 = vmul.f32 %v292_v33, %v284_v40  ;;  %v286_v47 = vld [vmem:[%s268_s25 + $0x28] sm:$0xff]  ;;  %v288_v48 = vld [vmem:[%s268_s25 + $0x38] sm:$0xff]  ;;  %v299_v49 = vmul.f32 %v291_v32, %v285_v45  ;;  %v301_v50 = vmul.f32 %v291_v32, %v287_v46 }
  0x2b   : > { %562 = vmatpush.bf16.msra.mxu3 %v876_v23  ;;  %v303_v43 = vpack.c.bf16 %v297_v39, %v295_v38  ;;  %v300_v51 = vmul.f32 %v292_v33, %v286_v47  ;;  %v302_v52 = vmul.f32 %v292_v33, %v288_v48 }
  0x2c   : > { %v304_v44 = vpack.c.bf16 %v298_v42, %v296_v41  ;;  %v305_v53 = vpack.c.bf16 %v301_v50, %v299_v49 }
  0x2d   : > { %506 = vmatpush.bf16.msra.mxu0 %v800_v28  ;;  %v306_v54 = vpack.c.bf16 %v302_v52, %v300_v51 }
  0x2e   : > { %525 = vmatpush.bf16.msra.mxu1 %v864_v30  ;;  %544 = vmatpush.bf16.msra.mxu2 %v804_v31 }
  0x2f   : > { %563 = vmatpush.bf16.msra.mxu3 %v868_v34 }
  0x30   : > { %507 = vmatmul.bf16.vlgmr.msra.gmra.mxu0 %v303_v43 }
  0x31   : > { %545 = vmatmul.bf16.vlgmr.msra.gmra.mxu2 %v303_v43  ;;  %526 = vmatmul.bf16.vlgmr.msra.gmra.mxu1 %v304_v44 }
  0x32   : > { %564 = vmatmul.bf16.vlgmr.msra.gmra.mxu3 %v304_v44 }
  0x40   : > { %512 = vmatmul.bf16.gmra.mxu0 %v305_v53 }
  0x41   : > { %550 = vmatmul.bf16.gmra.mxu2 %v305_v53  ;;  %531 = vmatmul.bf16.gmra.mxu1 %v306_v54 }
  0x42   : > { %569 = vmatmul.bf16.gmra.mxu3 %v306_v54 }
  0xad   : > { %v508_v55 = vpop.f32.mrf.mxu0 }
  0xae   : > { %v527_v56 = vpop.f32.mrf.mxu1 }
  0xaf   : > { %v528_v57 = vadd.f32 %v527_v56, %v508_v55 }
  0xb1   : > { %575 = vst [vmem:[%s1322_s26] sm:$0xff] %v528_v57 }
  0xb4   : > { %v546_v58 = vpop.f32.mrf.mxu2 }
  0xb5   : > { %v565_v59 = vpop.f32.mrf.mxu3  ;;  %v510_v61 = vpop.f32.mrf.mxu0 }
  0xb6   : > { %v566_v60 = vadd.f32 %v565_v59, %v546_v58  ;;  %v529_v62 = vpop.f32.mrf.mxu1 }
  0xb7   : > { %v530_v63 = vadd.f32 %v529_v62, %v510_v61 }
  0xb8   : > { %576 = vst [vmem:[%s1322_s26 + $0x8] sm:$0xff] %v566_v60 }
  0xb9   : > { %577 = vst [vmem:[%s1322_s26 + $0x10] sm:$0xff] %v530_v63 }
  0xbc   : > { %v548_v0 = vpop.f32.mrf.mxu2 }
  0xbd   : > { %v567_v1 = vpop.f32.mrf.mxu3  ;;  %v513_v3 = vpop.f32.mrf.mxu0 }
  0xbe   : > { %v568_v2 = vadd.f32 %v567_v1, %v548_v0  ;;  %v532_v4 = vpop.f32.mrf.mxu1 }
  0xbf   : > { %v533_v5 = vadd.f32 %v532_v4, %v513_v3 }
  0xc0   : > { %578 = vst [vmem:[%s1322_s26 + $0x18] sm:$0xff] %v568_v2 }
  0xc1   : > { %579 = vst [vmem:[%s1322_s26 + $0x20] sm:$0xff] %v533_v5 }
  0xc4   : > { %v551_v6 = vpop.f32.mrf.mxu2 }
  0xc5   : > { %v570_v7 = vpop.f32.mrf.mxu3  ;;  %v515_v9 = vpop.f32.mrf.mxu0 }
  0xc6   : > { %v571_v8 = vadd.f32 %v570_v7, %v551_v6  ;;  %v534_v10 = vpop.f32.mrf.mxu1 }
  0xc7   : > { %v535_v11 = vadd.f32 %v534_v10, %v515_v9 }
  0xc8   : > { %580 = vst [vmem:[%s1322_s26 + $0x28] sm:$0xff] %v571_v8 }
  0xc9   : > { %581 = vst [vmem:[%s1322_s26 + $0x30] sm:$0xff] %v535_v11 }
  0xcc   : > { %v553_v12 = vpop.f32.mrf.mxu2  ;;  %588 = sbr.rel (%p1313_p9) target bundleno = 214 (0xd6), region = 36 }
  0xcd   : > { %v572_v13 = vpop.f32.mrf.mxu3 }
  0xce   : > { %v573_v14 = vadd.f32 %v572_v13, %v553_v12 }
  0xd0   : > { %582 = vst [vmem:[%s1322_s26 + $0x38] sm:$0xff] %v573_v14 }
  0xd1   : > { %v589_v15 = vlaneseq  ;;  %v1040_v16 = vmov 0.0  }
  0xd3   : > { %vm591_vm0 = vcmp.lt.s32.totalorder %v589_v15, 256 }
  0xd4   : > { %593 = vst.msk [vmem:[%s1371_s4] sm:$0x3] %vm591_vm0, %v1040_v16 }
  0xd5   : > { %594 = vst.msk [vmem:[%s1372_s5] sm:$0x3] %vm591_vm0, %v1040_v16 }
  0xd6 PF: > { %v596_v17 = vadd.f32 %v530_v63, %v528_v57  ;;  %v605_v18 = vadd.f32 %v568_v2, %v566_v60  ;;  %v627_v19 = vmul.f32 %v528_v57, %v528_v57  ;;  %v628_v20 = vmul.f32 %v566_v60, %v566_v60 }
  0xd7   : > { %v629_v21 = vmul.f32 %v530_v63, %v530_v63  ;;  %v630_v22 = vmul.f32 %v568_v2, %v568_v2  ;;  %v631_v25 = vmul.f32 %v533_v5, %v533_v5  ;;  %v632_v26 = vmul.f32 %v571_v8, %v571_v8 }
  0xd8   : > { %v597_v23 = vadd.f32 %v596_v17, %v533_v5  ;;  %v606_v24 = vadd.f32 %v605_v18, %v571_v8  ;;  %v633_v27 = vmul.f32 %v535_v11, %v535_v11  ;;  %v634_v31 = vmul.f32 %v573_v14, %v573_v14 }
  0xd9   : > { %v635_v28 = vadd.f32 %v629_v21, %v627_v19  ;;  %v644_v32 = vadd.f32 %v630_v22, %v628_v20  ;;  %v621_v56 = vlaneseq  ;;  %vm617_vm1 = vcmask 1040384  }
  0xda   : > { %v598_v29 = vadd.f32 %v597_v23, %v535_v11  ;;  %v607_v30 = vadd.f32 %v606_v24, %v573_v14 }
  0xdb   : > { %v636_v33 = vadd.f32 %v635_v28, %v631_v25  ;;  %v645_v36 = vadd.f32 %v644_v32, %v632_v26  ;;  %v595_v59 = vld [vmem:[%s1371_s4] sm:$0x3]  ;;  %vm623_vm2 = vcmp.lt.s32.totalorder %v621_v56, 256 }
  0xdc   : > { %v599_v34 = vrot.slane %v598_v29, 4  ;;  %v608_v35 = vrot.slane %v607_v30, 4  ;;  %v626_v2 = vld [vmem:[%s1372_s5] sm:$0x3] }
  0xdd   : > { %v637_v37 = vadd.f32 %v636_v33, %v633_v27  ;;  %v646_v40 = vadd.f32 %v645_v36, %v634_v31 }
  0xde   : > { %v600_v38 = vadd.f32 %v599_v34, %v598_v29  ;;  %v609_v39 = vadd.f32 %v608_v35, %v607_v30 }
  0xdf   : > { %v638_v41 = vrot.slane %v637_v37, 4  ;;  %v647_v44 = vrot.slane %v646_v40, 4 }
  0xe0   : > { %v601_v42 = vrot.slane %v600_v38, 2  ;;  %v610_v43 = vrot.slane %v609_v39, 2 }
  0xe1   : > { %v639_v45 = vadd.f32 %v638_v41, %v637_v37  ;;  %v648_v48 = vadd.f32 %v647_v44, %v646_v40 }
  0xe2   : > { %v602_v46 = vadd.f32 %v601_v42, %v600_v38  ;;  %v611_v47 = vadd.f32 %v610_v43, %v609_v39 }
  0xe3   : > { %v640_v49 = vrot.slane %v639_v45, 2  ;;  %v649_v52 = vrot.slane %v648_v48, 2 }
  0xe4   : > { %v603_v50 = vrot.slane %v602_v46, 1  ;;  %v612_v51 = vrot.slane %v611_v47, 1 }
  0xe5   : > { %v641_v53 = vadd.f32 %v640_v49, %v639_v45  ;;  %v650_v57 = vadd.f32 %v649_v52, %v648_v48 }
  0xe6   : > { %v604_v54 = vadd.f32 %v603_v50, %v602_v46  ;;  %v613_v55 = vadd.f32 %v612_v51, %v611_v47 }
  0xe7   : > { %v642_v58 = vrot.slane %v641_v53, 1  ;;  %v651_v61 = vrot.slane %v650_v57, 1 }
  0xe8   : > { %v616_v60 = vrot.slane %v613_v55, 7 }
  0xe9   : > { %v643_v63 = vadd.f32 %v642_v58, %v641_v53  ;;  %v652_v0 = vadd.f32 %v651_v61, %v650_v57 }
  0xea   : > { %v618_v62 = vsel %vm617_vm1, %v604_v54, %v616_v60 }
  0xeb   : > { %v620_v1 = vadd.f32 %v618_v62, %v595_v59  ;;  %v655_v3 = vrot.slane %v652_v0, 7 }
  0xed   : > { %625 = vst.msk [vmem:[%s1371_s4] sm:$0x3] %vm623_vm2, %v620_v1  ;;  %v656_v4 = vsel %vm617_vm1, %v643_v63, %v655_v3 }
  0xee   : > { %v658_v5 = vadd.f32 %v656_v4, %v626_v2 }
  0xf0   : > { %659 = vst.msk [vmem:[%s1372_s5] sm:$0x3] %vm623_vm2, %v658_v5 }
  0xf1 PF: > { %s16_s22 = sadd.s32 1, %s1038_s22   ;;  %s1374_s18 = smov %s1030_s20 }
  0xf2   : > { %p13_p10 = scmp.ge.s32.totalorder %s16_s22, 6   ;;  %s1375_s19 = smov %s1034_s21 }
  0xf3   : > { %s1376_s20 = smov %s1379_s23  ;;  %s1377_s21 = smov %s1383_s24 }
  0xf4   :  { %15 = sbr.rel (!%p13_p10) target bundleno = 3 (0x3), region = 85 }

</bundles_post_ra>
